<compile_context>
chip_gen: v6e
topology: v6e:2x2x1
jax: 0.10.0
libtpu: 0.0.40
codegen_flags: <defaults>
</compile_context>

<pallas_src>
import math

import jax
import jax.numpy as jnp
from jax.experimental import pallas as pl
from jax.experimental.pallas import tpu as pltpu


def _mlp_kernel(x_ref, w1_ref, b1_ref, w2_ref, b2_ref, o_ref):
    # x_ref : (TM, in_dim)    bf16 row tile
    # w1_ref: (in_dim, 128)   bf16, VMEM-resident across the grid
    # b1_ref: (1, 128)        f32
    # w2_ref: (128, out_pad)  bf16, VMEM-resident (out_pad = out_dim rounded to 128)
    # b2_ref: (1, out_pad)    f32
    # o_ref : (TM, out_pad)   lane-dense output tile
    h = jnp.dot(x_ref[...], w1_ref[...], preferred_element_type=jnp.float32)
    h = jnp.maximum(h + b1_ref[...], 0.0)                   # bias + ReLU in f32
    # Explicit downcast of the ReLU activations to the matmul dtype (bf16) so
    # the second matmul also runs on the native MXU path; accumulate in f32.
    out = jnp.dot(h.astype(w2_ref.dtype), w2_ref[...],
                  preferred_element_type=jnp.float32)
    o_ref[...] = (out + b2_ref[...]).astype(o_ref.dtype)


def mlp_forward(x, w1, b1, w2, b2, *, block_m: int = 1024,
                compute_dtype=jnp.bfloat16):
    """Fused MLP forward: relu(x @ w1 + b1) @ w2 + b2.

    x  : (..., in_dim)
    w1 : (in_dim, hidden)   b1 : (hidden,)
    w2 : (hidden, out_dim)  b2 : (out_dim,)
    Returns (..., out_dim) in x.dtype.
    """
    orig_lead = x.shape[:-1]
    in_dim = x.shape[-1]
    hidden = w1.shape[1]
    out_dim = w2.shape[1]
    out_dtype = x.dtype

    # ---- Lane-dense output: pad out_dim to a multiple of 128 lanes. --------
    out_pad = pl.cdiv(out_dim, 128) * 128
    if out_pad != out_dim:
        w2 = jnp.pad(w2, ((0, 0), (0, out_pad - out_dim)))
        b2 = jnp.pad(b2, (0, out_pad - out_dim))

    # ---- Matmul operands in bf16, biases / epilogue in f32. ----------------
    x2d = x.reshape(-1, in_dim).astype(compute_dtype)
    w1c = w1.astype(compute_dtype)
    w2c = w2.astype(compute_dtype)
    b1_2d = b1.reshape(1, hidden).astype(jnp.float32)
    b2_2d = b2.reshape(1, out_pad).astype(jnp.float32)
    m = x2d.shape[0]

    # ---- Row-tile size from a VMEM budget (counts double-buffering of every
    # input, weights included) so the tile fits v7x's 64 MiB physical VMEM. --
    bytes_x = jnp.dtype(compute_dtype).itemsize
    bytes_o = jnp.dtype(out_dtype).itemsize
    weight_vmem = 2 * ((in_dim * hidden + hidden * out_pad) * bytes_x
                       + (hidden + out_pad) * 4)
    per_row = 2 * (in_dim * bytes_x + out_pad * bytes_o)     # dbl-buffered in+out
    vmem_budget = 40 * 1024 * 1024                           # headroom under 64 MiB
    tm_cap = max(8, ((vmem_budget - weight_vmem) // per_row) // 8 * 8)
    block_m = max(8, (block_m // 8) * 8)
    tm = min(block_m, tm_cap)
    if m <= tm:
        tm = m                     # single full block (full-dim exception to 8|tm)
    grid_m = pl.cdiv(m, tm)        # no jnp.pad: Pallas masks the partial last tile

    need_bytes = weight_vmem + tm * per_row
    compiler_kwargs = dict(dimension_semantics=("parallel",))
    if need_bytes > 24 * 1024 * 1024:
        compiler_kwargs["vmem_limit_bytes"] = min(60 * 1024 * 1024,
                                                  int(need_bytes * 1.25))

    cost = pl.CostEstimate(
        flops=2 * m * (in_dim * hidden + hidden * out_pad),
        transcendentals=0,
        bytes_accessed=(m * in_dim * bytes_x + m * out_pad * bytes_o
                        + (in_dim * hidden + hidden * out_pad) * bytes_x
                        + (hidden + out_pad) * 4),
    )

    out = pl.pallas_call(
        _mlp_kernel,
        out_shape=jax.ShapeDtypeStruct((m, out_pad), out_dtype),
        grid_spec=pltpu.PrefetchScalarGridSpec(
            num_scalar_prefetch=0,
            grid=(grid_m,),
            in_specs=[
                # Row tile of the input marches along the grid.
                pl.BlockSpec((tm, in_dim), lambda i: (i, 0)),
                # Weights / biases: constant block index -> DMA'd once,
                # VMEM-resident for the whole grid.
                pl.BlockSpec((in_dim, hidden), lambda i: (0, 0)),
                pl.BlockSpec((1, hidden), lambda i: (0, 0)),
                pl.BlockSpec((hidden, out_pad), lambda i: (0, 0)),
                pl.BlockSpec((1, out_pad), lambda i: (0, 0)),
            ],
            out_specs=pl.BlockSpec((tm, out_pad), lambda i: (i, 0)),
        ),
        compiler_params=pltpu.CompilerParams(**compiler_kwargs),
        cost_estimate=cost,
    )(x2d, w1c, b1_2d, w2c, b2_2d)

    if out_pad != out_dim:
        out = out[:, :out_dim]
    return out.reshape(*orig_lead, out_dim)


if __name__ == "__main__":
    in_dim, hidden, out_dim = 32, 128, 16

    key = jax.random.PRNGKey(0)
    kx, k1, k2, k3, k4, kb = jax.random.split(key, 6)

    # PyTorch nn.Linear default init: U(-1/sqrt(fan_in), 1/sqrt(fan_in)).
    # Weights stored already transposed to (in, out) so the kernel does x @ W.
    lim1 = 1.0 / math.sqrt(in_dim)
    w1 = jax.random.uniform(k1, (in_dim, hidden), jnp.float32, -lim1, lim1)
    b1 = jax.random.uniform(k2, (hidden,), jnp.float32, -lim1, lim1)
    lim2 = 1.0 / math.sqrt(hidden)
    w2 = jax.random.uniform(k3, (hidden, out_dim), jnp.float32, -lim2, lim2)
    b2 = jax.random.uniform(k4, (out_dim,), jnp.float32, -lim2, lim2)

    def ref_matched(xin):
        # Same bf16 operands / f32 accumulation / f32 epilogue as the kernel.
        xb = xin.reshape(-1, in_dim).astype(jnp.bfloat16)
        h = jnp.dot(xb, w1.astype(jnp.bfloat16),
                    preferred_element_type=jnp.float32) + b1
        h = jnp.maximum(h, 0.0)
        o = jnp.dot(h.astype(jnp.bfloat16), w2.astype(jnp.bfloat16),
                    preferred_element_type=jnp.float32) + b2
        return o.reshape(*xin.shape[:-1], out_dim).astype(xin.dtype)

    def ref_f32(xin):
        return jnp.maximum(xin @ w1 + b1, 0.0) @ w2 + b2

    # Check A: multi-dim leading shape, default tiling (single full tile).
    xa = jax.random.normal(kx, (2, 16, in_dim), dtype=jnp.float32)
    out_a = jax.block_until_ready(mlp_forward(xa, w1, b1, w2, b2))
    assert out_a.shape == (2, 16, out_dim)
    assert jnp.allclose(out_a, ref_matched(xa), atol=1e-3, rtol=1e-3), float(
        jnp.max(jnp.abs(out_a - ref_matched(xa))))
    assert jnp.allclose(out_a, ref_f32(xa), atol=5e-2, rtol=5e-2)

    # Check B: rows not a multiple of the tile -> exercises a multi-step grid
    # (>=2 tiles for v7x megacore) and the masked partial final block.
    xb_in = jax.random.normal(kb, (20, in_dim), dtype=jnp.float32)
    out_b = jax.block_until_ready(mlp_forward(xb_in, w1, b1, w2, b2, block_m=16))
    assert out_b.shape == (20, out_dim)
    assert jnp.allclose(out_b, ref_matched(xb_in), atol=1e-3, rtol=1e-3), float(
        jnp.max(jnp.abs(out_b - ref_matched(xb_in))))
    assert jnp.allclose(out_b, ref_f32(xb_in), atol=5e-2, rtol=5e-2)

    print("KERNEL_OK")
</pallas_src>

<mosaic_0001>
module attributes {stable_mosaic.version = 11 : i64} {
  func.func @_mlp_kernel(%arg0: i32, %arg1: memref<32x32xbf16, #tpu.memory_space<vmem>>, %arg2: memref<32x128xbf16, #tpu.memory_space<vmem>>, %arg3: memref<1x128xf32, #tpu.memory_space<vmem>>, %arg4: memref<128x128xbf16, #tpu.memory_space<vmem>>, %arg5: memref<1x128xf32, #tpu.memory_space<vmem>>, %arg6: memref<32x128xf32, #tpu.memory_space<vmem>>) attributes {dimension_semantics = [#tpu.dimension_semantics<parallel>], iteration_bounds = array<i64: 1>, scalar_prefetch = 0 : i64, scratch_operands = 0 : i64, tpu.core_type = #tpu.core_type<tc>, window_params = [{transform_indices = @transform_0, window_bounds = array<i64: 32, 32>}, {pipeline_mode = #tpu.pipeline_mode<synchronous>, transform_indices = @transform_1, window_bounds = array<i64: 32, 128>}, {pipeline_mode = #tpu.pipeline_mode<synchronous>, transform_indices = @transform_2, window_bounds = array<i64: 1, 128>}, {pipeline_mode = #tpu.pipeline_mode<synchronous>, transform_indices = @transform_3, window_bounds = array<i64: 128, 128>}, {pipeline_mode = #tpu.pipeline_mode<synchronous>, transform_indices = @transform_4, window_bounds = array<i64: 1, 128>}, {transform_indices = @transform_5, window_bounds = array<i64: 32, 128>}]} {
    %c0 = arith.constant 0 : index
    %c0_0 = arith.constant 0 : index
    %0 = vector.load %arg1[%c0, %c0_0] : memref<32x32xbf16, #tpu.memory_space<vmem>>, vector<32x32xbf16>
    %c0_1 = arith.constant 0 : index
    %c0_2 = arith.constant 0 : index
    %1 = vector.load %arg2[%c0_1, %c0_2] : memref<32x128xbf16, #tpu.memory_space<vmem>>, vector<32x128xbf16>
    %cst = arith.constant dense<0.000000e+00> : vector<32x128xf32>
    %2 = tpu.matmul %0, %1, %cst {dimension_numbers = #tpu.dot_dimension_numbers<[1], [0], [0], [1], [0, 0, 1, 1], [], []>} : vector<32x32xbf16>, vector<32x128xbf16>, vector<32x128xf32> -> vector<32x128xf32>
    %c0_3 = arith.constant 0 : index
    %c0_4 = arith.constant 0 : index
    %3 = vector.load %arg3[%c0_3, %c0_4] : memref<1x128xf32, #tpu.memory_space<vmem>>, vector<1x128xf32>
    %4 = vector.broadcast %3 : vector<1x128xf32> to vector<32x128xf32>
    %5 = arith.addf %2, %4 : vector<32x128xf32>
    %cst_5 = arith.constant 0.000000e+00 : f32
    %6 = vector.broadcast %cst_5 : f32 to vector<32x128xf32>
    %7 = arith.maximumf %5, %6 : vector<32x128xf32>
    %8 = arith.truncf %7 : vector<32x128xf32> to vector<32x128xbf16>
    %c0_6 = arith.constant 0 : index
    %c0_7 = arith.constant 0 : index
    %9 = vector.load %arg4[%c0_6, %c0_7] : memref<128x128xbf16, #tpu.memory_space<vmem>>, vector<128x128xbf16>
    %cst_8 = arith.constant dense<0.000000e+00> : vector<32x128xf32>
    %10 = tpu.matmul %8, %9, %cst_8 {dimension_numbers = #tpu.dot_dimension_numbers<[1], [0], [0], [1], [0, 0, 1, 1], [], []>} : vector<32x128xbf16>, vector<128x128xbf16>, vector<32x128xf32> -> vector<32x128xf32>
    %c0_9 = arith.constant 0 : index
    %c0_10 = arith.constant 0 : index
    %11 = vector.load %arg5[%c0_9, %c0_10] : memref<1x128xf32, #tpu.memory_space<vmem>>, vector<1x128xf32>
    %12 = vector.broadcast %11 : vector<1x128xf32> to vector<32x128xf32>
    %13 = arith.addf %10, %12 : vector<32x128xf32>
    %c0_11 = arith.constant 0 : index
    %c0_12 = arith.constant 0 : index
    %14 = vector.load %arg6[%c0_11, %c0_12] : memref<32x128xf32, #tpu.memory_space<vmem>>, vector<32x128xf32>
    tpu.vector_store %arg6[%c0_11, %c0_12], %13 {strides = array<i32>} : memref<32x128xf32, #tpu.memory_space<vmem>>, vector<32x128xf32>,
    return
  }
  func.func @transform_0(%arg0: i32) -> (i32, i32) {
    %c0_i32 = arith.constant 0 : i32
    %c0_i32_0 = arith.constant 0 : i32
    return %arg0, %c0_i32 : i32, i32
  }
  func.func @transform_1(%arg0: i32) -> (i32, i32) {
    %c0_i32 = arith.constant 0 : i32
    %c0_i32_0 = arith.constant 0 : i32
    %c0_i32_1 = arith.constant 0 : i32
    return %c0_i32, %c0_i32_0 : i32, i32
  }
  func.func @transform_2(%arg0: i32) -> (i32, i32) {
    %c0_i32 = arith.constant 0 : i32
    %c0_i32_0 = arith.constant 0 : i32
    %c0_i32_1 = arith.constant 0 : i32
    return %c0_i32, %c0_i32_0 : i32, i32
  }
  func.func @transform_3(%arg0: i32) -> (i32, i32) {
    %c0_i32 = arith.constant 0 : i32
    %c0_i32_0 = arith.constant 0 : i32
    %c0_i32_1 = arith.constant 0 : i32
    return %c0_i32, %c0_i32_0 : i32, i32
  }
  func.func @transform_4(%arg0: i32) -> (i32, i32) {
    %c0_i32 = arith.constant 0 : i32
    %c0_i32_0 = arith.constant 0 : i32
    %c0_i32_1 = arith.constant 0 : i32
    return %c0_i32, %c0_i32_0 : i32, i32
  }
  func.func @transform_5(%arg0: i32) -> (i32, i32) {
    %c0_i32 = arith.constant 0 : i32
    %c0_i32_0 = arith.constant 0 : i32
    return %arg0, %c0_i32 : i32, i32
  }
}

</mosaic_0001>

<bundles_post_ra>
// kernel: tpu_custom_call.1
= control target key start
LH: loop header
LB: loop body
LE: loop exit
PB: predicated region body
PF: predicated region fallthrough
CT: control target
= control target key end

     0   :  { %10 = vsyncpa [#allocation3], 0  ;;  %s524_s0 = inlined_call_operand.hbm [shape: bf16[32,32], index: 0, kind: input, shape index: {}]   ;;  %s525_s1 = inlined_call_operand.hbm [shape: bf16[32,128], index: 1, kind: input, shape index: {}]   ;;  %s526_s2 = inlined_call_operand.vmem [shape: f32[1,128], index: 2, kind: input, shape index: {}]   ;;  %s527_s3 = inlined_call_operand.hbm [shape: bf16[128,128], index: 3, kind: input, shape index: {}]   ;;  %s528_s4 = inlined_call_operand.vmem [shape: f32[1,128], index: 4, kind: input, shape index: {}]   ;;  %s529_s5 = inlined_call_operand.hbm [shape: f32[32,128], index: 5, kind: output, shape index: {}]  }
   0x1   :  { %11 = vsyncpa [#allocation6], 0 }
   0x2   :  { %12 = vsyncpa [#allocation4], 0  ;;  %s468_s18 = smov [#allocation5]   ;;  %s469_s20 = smov [#allocation2]  }
   0x3   :  { %s30_s19 = sshll.u32 %s468_s18, 4  ;;  %s18_s21 = sshll.u32 %s469_s20, 4  ;;  %s31_s19 = int_to_ptr.vmem [resolvable:$true] %s30_s19  ;;  %s19_s21 = int_to_ptr.vmem [resolvable:$true] %s18_s21 }
   0x4   :  { %s390_s22 = scalar_lea.vmem %s31_s19, 256  ;;  %p395_p1 = scmp.lt.s32.totalorder %s31_s19, %s31_s19 }
   0x5   :  { %p391_p0 = scmp.ne.s32.totalorder %s31_s19, %s390_s22  ;;  %p396_p2 = scmp.lt.s32.totalorder %s390_s22, %s390_s22 }
   0x7   :  { %p397_p3 = por %p396_p2, %p395_p1 }
   0x9   :  { %p398_p4 = pnand %p397_p3, %p391_p0 }
   0xb   :  { %401 = shalt.err (!%p398_p4)
}
   0xc   :  { %s470_s23 = smov 64   ;;  %s471_s24 = smov 4  }
   0xd   :  { %36 = dma.hbm_to_vmem [thread:$0]  %s525_s1, 256, %s31_s19, [#allocation6], %s470_s23, %s470_s23, %s471_s24  }
   0xe   :  { %s410_s27 = scalar_lea.vmem %s19_s21, 256  ;;  %p415_p6 = scmp.lt.s32.totalorder %s19_s21, %s19_s21 }
   0xf   :  { %p411_p5 = scmp.ne.s32.totalorder %s19_s21, %s410_s27  ;;  %p416_p7 = scmp.lt.s32.totalorder %s410_s27, %s410_s27 }
  0x11   :  { %p417_p8 = por %p416_p7, %p415_p6 }
  0x13   :  { %p418_p9 = pnand %p417_p8, %p411_p5 }
  0x15   :  { %421 = shalt.err (!%p418_p9)
}
  0x16   :  { %24 = dma.hbm_to_vmem [thread:$0]  %s524_s0, 256, %s19_s21, [#allocation3], %s470_s23, %s470_s23, %s471_s24  }
  0x17   :  { %s472_s30 = smov [#allocation7]  }
  0x18   :  { %s44_s6 = sshll.u32 %s472_s30, 4  ;;  %s45_s6 = int_to_ptr.vmem [resolvable:$true] %s44_s6 }
  0x19   :  { %s430_s7 = scalar_lea.vmem %s45_s6, 1024  ;;  %p435_p11 = scmp.lt.s32.totalorder %s45_s6, %s45_s6 }
  0x1a   :  { %p431_p10 = scmp.ne.s32.totalorder %s45_s6, %s430_s7  ;;  %p436_p12 = scmp.lt.s32.totalorder %s430_s7, %s430_s7 }
  0x1c   :  { %p437_p13 = por %p436_p12, %p435_p11 }
  0x1e   :  { %p438_p0 = pnand %p437_p13, %p431_p10 }
  0x20   :  { %441 = shalt.err (!%p438_p0)
}
  0x21   :  { %50 = dma.hbm_to_vmem [thread:$0]  %s527_s3, 1024, %s45_s6, [#allocation6], %s470_s23, %s470_s23, %s471_s24  }
  0x22   :  { %462 = dma.done.wait [#allocation3], 256  }
  0x23   :  { %463 = vsyncadd [#allocation3], 4294967040 }
  0x24   :  { %464 = dma.done.wait [#allocation6], 1280  }
  0x25   :  { %465 = vsyncadd [#allocation6], 4294966016  ;;  %v370_v0 = vld [vmem:[#allocation5 + $0x8] sm:$0xff]   ;;  %v371_v1 = vld [vmem:[#allocation5] sm:$0xff]   ;;  %vm100_vm0 = vcmask 261120  }
  0x26   :  { %334 = vmatprep.subr.bf16.mxu0 %v370_v0  ;;  %v372_v2 = vld [vmem:[#allocation2] sm:$0xff]   ;;  %v374_v3 = vld [vmem:[#allocation7 + $0x38] sm:$0xff]   ;;  %v375_v4 = vld [vmem:[#allocation7 + $0x30] sm:$0xff]  }
  0x27   :  { %335 = vmatpush3.bf16.msra.mxu0 %v370_v0  ;;  %338 = vmatprep.mubr.msk.bf16.mxu0 %vm100_vm0, %v372_v2  ;;  %v373_v5 = vld [vmem:[#allocation2 + $0x8] sm:$0xff]   ;;  %v377_v7 = vld [vmem:[#allocation7 + $0x20] sm:$0xff]   ;;  %v378_v8 = vld [vmem:[#allocation7 + $0x18] sm:$0xff]  }
  0x28   :  { %336 = vmatprep.subr.bf16.mxu0 %v371_v1  ;;  %342 = vmatprep.subr.bf16.mxu1 %v374_v3  ;;  %v376_v6 = vld [vmem:[#allocation7 + $0x28] sm:$0xff]   ;;  %v379_v9 = vld [vmem:[#allocation7 + $0x10] sm:$0xff]   ;;  %v381_v11 = vld [vmem:[#allocation7] sm:$0xff]  }
  0x29   :  { %343 = vmatpush3.bf16.msra.mxu1 %v374_v3  ;;  %v380_v10 = vld [vmem:[#allocation7 + $0x8] sm:$0xff]   ;;  %v304_v14 = vld [vmem:[%s526_s2] ss:$0 sm:$0xff]  ;;  %s473_s2 = smov [#allocation8]  }
  0x2a   :  { %344 = vmatprep.subr.bf16.mxu1 %v375_v4  ;;  %v311_v27 = vld [vmem:[%s528_s4] ss:$0 sm:$0xff]  ;;  %s291_s11 = sshll.u32 %s473_s2, 4  ;;  %s292_s11 = int_to_ptr.vmem [resolvable:$true] %s291_s11 }
  0x2b   :  { %337 = vmatpush3.bf16.msra.mxu0 %v371_v1  ;;  %s442_s12 = scalar_lea.vmem %s292_s11, 512  ;;  %p447_p2 = scmp.lt.s32.totalorder %s292_s11, %s292_s11 }
  0x2c   :  { %p443_p1 = scmp.ne.s32.totalorder %s292_s11, %s442_s12  ;;  %p448_p3 = scmp.lt.s32.totalorder %s442_s12, %s442_s12 }
  0x2d   :  { %345 = vmatpush3.bf16.msra.mxu1 %v375_v4 }
  0x2e   :  { %339 = vmatmul.mubr.msk.bf16.vlgmr.msra.gmra.mxu0 %vm100_vm0, %v373_v5  ;;  %346 = vmatprep.subr.bf16.mxu1 %v376_v6  ;;  %p449_p4 = por %p448_p3, %p447_p2 }
  0x30   :  { %p450_p5 = pnand %p449_p4, %p443_p1 }
  0x31   :  { %347 = vmatpush3.bf16.msra.mxu1 %v376_v6 }
  0x32   :  { %348 = vmatprep.subr.bf16.mxu1 %v377_v7 }
  0x35   :  { %349 = vmatpush3.bf16.msra.mxu1 %v377_v7 }
  0x36   :  { %350 = vmatprep.subr.bf16.mxu1 %v378_v8 }
  0x39   :  { %351 = vmatpush3.bf16.msra.mxu1 %v378_v8 }
  0x3a   :  { %352 = vmatprep.subr.bf16.mxu1 %v379_v9 }
  0x3d   :  { %353 = vmatpush3.bf16.msra.mxu1 %v379_v9 }
  0x3e   :  { %354 = vmatprep.subr.bf16.mxu1 %v380_v10 }
  0x41   :  { %355 = vmatpush3.bf16.msra.mxu1 %v380_v10 }
  0x42   :  { %356 = vmatprep.subr.bf16.mxu1 %v381_v11 }
  0x45   :  { %357 = vmatpush3.bf16.msra.mxu1 %v381_v11 }
  0xee   :  { %v340_v12 = vpop.f32.mrf.mxu0 }
  0xef   :  { %v150_v18 = vadd.f32 %v340_v12, %v304_v14 }
  0xf0   :  { %v141_v13 = vpop.f32.mrf.mxu0 }
  0xf1   :  { %v142_v16 = vadd.f32 %v304_v14, %v141_v13  ;;  %v158_v24 = vmax.f32 %v150_v18, 0.0 }
  0xf2   :  { %v341_v15 = vpop.f32.mrf.mxu0 }
  0xf3   :  { %v153_v17 = vadd.f32 %v341_v15, %v304_v14  ;;  %v156_v22 = vmax.f32 %v142_v16, 0.0 }
  0xf4   :  { %v144_v19 = vpop.f32.mrf.mxu0 }
  0xf5   :  { %v145_v20 = vadd.f32 %v304_v14, %v144_v19  ;;  %v159_v21 = vmax.f32 %v153_v17, 0.0 }
  0xf7   :  { %v157_v23 = vmax.f32 %v145_v20, 0.0  ;;  %v161_v26 = vpack.c.bf16 %v159_v21, %v158_v24 }
  0xf9   :  { %v160_v25 = vpack.c.bf16 %v157_v23, %v156_v22 }
  0xfb   :  { %358 = vmatprep.mubr.bf16.mxu1 %v160_v25 }
  0xfc   :  { %359 = vmatmul.mubr.bf16.vlgmr.msra.gmra.mxu1 %v161_v26 }
 0x1bc   :  { %v360_v28 = vpop.f32.mrf.mxu1 }
 0x1bd   :  { %v276_v29 = vadd.f32 %v360_v28, %v311_v27 }
 0x1be   :  { %v267_v30 = vpop.f32.mrf.mxu1 }
 0x1bf   :  { %284 = vst [vmem:[#allocation8 + $0x10] sm:$0xff] %v276_v29  ;;  %v268_v31 = vadd.f32 %v311_v27, %v267_v30 }
 0x1c0   :  { %v361_v32 = vpop.f32.mrf.mxu1 }
 0x1c1   :  { %282 = vst [vmem:[#allocation8] sm:$0xff] %v268_v31  ;;  %v279_v33 = vadd.f32 %v361_v32, %v311_v27 }
 0x1c2   :  { %v270_v34 = vpop.f32.mrf.mxu1 }
 0x1c3   :  { %285 = vst [vmem:[#allocation8 + $0x18] sm:$0xff] %v279_v33  ;;  %v271_v35 = vadd.f32 %v311_v27, %v270_v34 }
 0x1c5   :  { %283 = vst [vmem:[#allocation8 + $0x8] sm:$0xff] %v271_v35 }
 0x1c6   :  { %453 = shalt.err (!%p450_p5)
}
 0x1c7   :  { %s474_s4 = smov 128   ;;  %s475_s13 = smov 8  }
 0x1c8   :  { %297 = dma.vmem_to_hbm [thread:$0]  %s292_s11, 512, %s529_s5, [#allocation4], %s474_s4, %s474_s4, %s475_s13  }
 0x1c9   :  { %466 = dma.done.wait [#allocation4], 512  }
 0x1ca   :  { %467 = vsyncadd [#allocation4], 4294966784 }
 0x1cb   :  { %301 = vsyncpa [#allocation3], 1 }
 0x1cc   :  { %302 = vsyncpa [#allocation6], 1 }
 0x1cd   :  { %303 = vsyncpa [#allocation4], 1 }

</bundles_post_ra>
